<compile_context>
chip_gen: v6e
topology: v6e:2x2x1
jax: 0.10.0
libtpu: 0.0.40
codegen_flags: <defaults>
</compile_context>

<pallas_src>
import math
import time

import jax
import jax.numpy as jnp
from jax.experimental import pallas as pl
from jax.experimental.pallas import tpu as pltpu  # noqa: F401  (TPU backend)

AMP = 10.0
INTERVAL = 200.0
BETA = 100.0


def _identity_kernel(x_ref, o_ref):
    # The forward pass's only tensor op: pass x through unchanged.
    o_ref[...] = x_ref[...]


def dummy_model_forward(x):
    """Identity forward on x via a single lane-dense Pallas block."""
    n, c, h, w = x.shape
    x2d = x.reshape(n * c, h * w)  # (8, 256): (8,128)-aligned, lane-dense

    out2d = pl.pallas_call(
        _identity_kernel,
        out_shape=jax.ShapeDtypeStruct(x2d.shape, x2d.dtype),
        in_specs=[pl.BlockSpec(x2d.shape, lambda: (0, 0))],
        out_specs=pl.BlockSpec(x2d.shape, lambda: (0, 0)),
        # Output aliases the reshaped-input buffer (which is not used after
        # this call) -> no fresh HBM output allocation / extra copy.
        input_output_aliases={0: 0},
    )(x2d)

    return out2d.reshape(n, c, h, w)


class DummyModelPallas:
    """Stateful wrapper mirroring the PyTorch module's call_count bookkeeping."""

    def __init__(self, amp: float = 10, interval: float = 200, beta: float = 100):
        self.amp = float(amp)
        self.interval = float(interval)
        self.beta = float(beta)
        self.call_count = 0

    def __call__(self, x):
        # Duration depends only on host scalars -> compute on host.  No device
        # round-trip, no blocking readback; the device output stays async.
        duration_ms = (
            self.amp * math.sin(2.0 * math.pi * self.call_count / self.interval)
            + self.beta
        )
        self.call_count += 1

        out = dummy_model_forward(x)

        # TODO(synk): logger.info(f'Sleep for {duration:.2f}ms') has no Pallas
        # equivalent; logging omitted.
        time.sleep(duration_ms / 1000.0)  # host-side sleep, same semantics as torch
        return out


if __name__ == "__main__":
    key = jax.random.PRNGKey(0)
    x = jax.random.normal(key, (2, 4, 16, 16), dtype=jnp.float32)  # NCHW

    model = DummyModelPallas()
    y = model(x)
    y = jax.block_until_ready(y)

    assert y.shape == x.shape and y.dtype == x.dtype
    assert bool(jnp.array_equal(y, x))
    print("KERNEL_OK")
</pallas_src>

<mosaic_0001>
module attributes {stable_mosaic.version = 11 : i64} {
  func.func @_identity_kernel(%arg0: memref<8x256xf32, #tpu.memory_space<vmem>>, %arg1: memref<8x256xf32, #tpu.memory_space<vmem>>) attributes {dimension_semantics = [], scalar_prefetch = 0 : i64, scratch_operands = 0 : i64, tpu.core_type = #tpu.core_type<tc>} {
    %c0 = arith.constant 0 : index
    %c0_0 = arith.constant 0 : index
    %0 = vector.load %arg0[%c0, %c0_0] : memref<8x256xf32, #tpu.memory_space<vmem>>, vector<8x256xf32>
    %c0_1 = arith.constant 0 : index
    %c0_2 = arith.constant 0 : index
    %1 = vector.load %arg1[%c0_1, %c0_2] : memref<8x256xf32, #tpu.memory_space<vmem>>, vector<8x256xf32>
    tpu.vector_store %arg1[%c0_1, %c0_2], %0 {strides = array<i32>} : memref<8x256xf32, #tpu.memory_space<vmem>>, vector<8x256xf32>,
    return
  }
}

</mosaic_0001>

<bundles_post_ra>
// kernel: tpu_custom_call.1
= control target key start
LH: loop header
LB: loop body
LE: loop exit
PB: predicated region body
PF: predicated region fallthrough
CT: control target
= control target key end

     0   :  { %6 = vsyncpa [#allocation3], 0  ;;  %s104_s0 = inlined_call_operand.hbm [shape: f32[8,256], index: 0, kind: input, shape index: {}, may-alias: {0,1}]   ;;  %s105_s1 = inlined_call_operand.hbm [shape: f32[8,256], index: 1, kind: output, shape index: {}, may-alias: {0,1}]  }
   0x1   :  { %7 = vsyncpa [#allocation4], 0  ;;  %s86_s6 = smov [#allocation2]  }
   0x2   :  { %s14_s7 = sshll.u32 %s86_s6, 4  ;;  %s15_s7 = int_to_ptr.vmem [resolvable:$true] %s14_s7 }
   0x3   :  { %s50_s8 = scalar_lea.vmem %s15_s7, 256  ;;  %p55_p1 = scmp.lt.s32.totalorder %s15_s7, %s15_s7 }
   0x4   :  { %p51_p0 = scmp.ne.s32.totalorder %s15_s7, %s50_s8  ;;  %p56_p2 = scmp.lt.s32.totalorder %s50_s8, %s50_s8 }
   0x6   :  { %p57_p3 = por %p56_p2, %p55_p1 }
   0x8   :  { %p58_p4 = pnand %p57_p3, %p51_p0 }
   0xa   :  { %61 = shalt.err (!%p58_p4)
}
   0xb   :  { %17 = dma.hbm_to_vmem [thread:$0]  %s104_s0, 256, %s15_s7, [#allocation3]  }
   0xc   :  { %82 = dma.done.wait [#allocation3], 256  }
   0xd   :  { %83 = vsyncadd [#allocation3], 4294967040  ;;  %s87_s11 = smov [#allocation5]   ;;  %v21_v0 = vld [vmem:[#allocation2] sm:$0xff]  ;;  %v22_v1 = vld [vmem:[#allocation2 + $0x8] sm:$0xff] }
   0xe   :  { %s31_s12 = sshll.u32 %s87_s11, 4  ;;  %23 = vst [vmem:[#allocation5] sm:$0xff] %v21_v0  ;;  %24 = vst [vmem:[#allocation5 + $0x8] sm:$0xff] %v22_v1  ;;  %s32_s12 = int_to_ptr.vmem [resolvable:$true] %s31_s12 }
   0xf   :  { %s62_s13 = scalar_lea.vmem %s32_s12, 256  ;;  %p67_p6 = scmp.lt.s32.totalorder %s32_s12, %s32_s12 }
  0x10   :  { %p63_p5 = scmp.ne.s32.totalorder %s32_s12, %s62_s13  ;;  %p68_p7 = scmp.lt.s32.totalorder %s62_s13, %s62_s13 }
  0x12   :  { %p69_p8 = por %p68_p7, %p67_p6 }
  0x14   :  { %p70_p9 = pnand %p69_p8, %p63_p5 }
  0x16   :  { %73 = shalt.err (!%p70_p9)
}
  0x17   :  { %34 = dma.vmem_to_hbm [thread:$0]  %s32_s12, 256, %s105_s1, [#allocation4]  }
  0x18   :  { %84 = dma.done.wait [#allocation4], 256  }
  0x19   :  { %85 = vsyncadd [#allocation4], 4294967040 }
  0x1a   :  { %38 = vsyncpa [#allocation3], 1 }
  0x1b   :  { %39 = vsyncpa [#allocation4], 1 }

</bundles_post_ra>
